<compile_context>
chip_gen: v6e
topology: v6e:2x2x1
jax: 0.10.0
libtpu: 0.0.40
codegen_flags: <defaults>
</compile_context>

<pallas_src>
import jax
import jax.numpy as jnp
from jax.experimental import pallas as pl
from jax.experimental.pallas import tpu as pltpu

EPS = 1e-5
KH = KW = 3
C_IN = 4
C_OUT = 8
KKC = KH * KW * C_IN          # 36
KP = 40                       # contraction dim padded to a multiple of 8


def bn_then_conv(x_nchw, w_oihw, b, gamma, beta):
    """x_nchw: (N, C_IN, H, W) f32 -> (N, C_OUT, H-2, W-2) f32 (NCHW, like PyTorch)."""
    N, C, H, W = x_nchw.shape
    assert C == C_IN
    OH, OW = H - KH + 1, W - KW + 1
    HW = H * W
    NHW = N * HW
    inv_count = 1.0 / float(NHW)

    # ---- free / tiny layout plumbing (no HBM transpose of x) ----------------
    x3 = x_nchw.reshape(N, C, HW)                                     # free reshape
    w_mat = jnp.transpose(w_oihw, (0, 2, 3, 1)).reshape(C_OUT, KKC)   # 288 elems
    w_pad = jnp.pad(w_mat, ((0, 0), (0, KP - KKC))).astype(jnp.float32)  # (8, 40)
    b2 = b.reshape(C_OUT, 1).astype(jnp.float32)
    g2 = gamma.reshape(C, 1).astype(jnp.float32)
    be2 = beta.reshape(C, 1).astype(jnp.float32)

    # =============== single fused kernel: stats + BN + conv ==================
    def fused_kernel(x_ref, w_ref, b_ref, g_ref, bt_ref, o_ref):
        # Whole batch lane-major: (C, N*HW).  8 KB at these shapes.
        xcat = jnp.concatenate([x_ref[n] for n in range(N)], axis=1)

        # --- per-channel batch stats (lane reduction), two-pass / centered ---
        mean = jnp.sum(xcat, axis=1, keepdims=True) * inv_count       # (C, 1)
        xc = xcat - mean
        var = jnp.sum(xc * xc, axis=1, keepdims=True) * inv_count     # biased var
        s = g_ref[...] * jax.lax.rsqrt(var + EPS)                     # (C, 1)
        xn = xc * s + bt_ref[...]                                     # normalized

        # --- im2col: 9 lane-rolled copies (XLU) + 4 zero rows -> (40, N*HW) --
        # For every valid output position p = oh*W + ow the rolled row holds
        # xn[ci, p + kh*W + kw]; wrapped / cross-image tail values only land on
        # positions that are sliced away in the wrapper (VALID conv).
        pieces = []
        for kh in range(KH):
            for kw in range(KW):
                d = kh * W + kw
                pieces.append(xn if d == 0
                              else pltpu.roll(xn, shift=NHW - d, axis=1))
        pieces.append(jnp.zeros_like(xn))                             # pad K to 40
        xb = jnp.concatenate(pieces, axis=0)                          # (40, N*HW)

        # --- single MXU matmul, lane-dense output -----------------------------
        y = jnp.dot(w_ref[...], xb, preferred_element_type=jnp.float32)
        y = y + b_ref[...]                                            # (8, N*HW)
        for n in range(N):
            o_ref[n] = y[:, n * HW:(n + 1) * HW].astype(o_ref.dtype)

    out3 = pl.pallas_call(
        fused_kernel,
        out_shape=jax.ShapeDtypeStruct((N, C_OUT, HW), jnp.float32),
    )(x3, w_pad, b2, g2, be2)

    # free reshape + one small slice dropping the invalid (wrapped) columns
    return out3.reshape(N, C_OUT, H, W)[:, :, :OH, :OW]


def _reference(x_nchw, w_oihw, b, gamma, beta):
    # Pure-JAX reference for verification.
    mean = jnp.mean(x_nchw, axis=(0, 2, 3), keepdims=True)
    var = jnp.mean((x_nchw - mean) ** 2, axis=(0, 2, 3), keepdims=True)
    xn = (x_nchw - mean) * jax.lax.rsqrt(var + EPS)
    xn = xn * gamma.reshape(1, -1, 1, 1) + beta.reshape(1, -1, 1, 1)
    y = jax.lax.conv_general_dilated(
        xn, w_oihw, window_strides=(1, 1), padding="VALID",
        dimension_numbers=("NCHW", "OIHW", "NCHW"),
        precision=jax.lax.Precision.HIGHEST)
    return y + b.reshape(1, -1, 1, 1)


if __name__ == "__main__":
    key = jax.random.PRNGKey(0)
    kx, kw, kb, kg, kbe = jax.random.split(key, 5)

    # Small shapes consistent with the module (Conv2d(4, 8, 3) on 4-ch input).
    N, H, W = 2, 16, 16
    x = jax.random.normal(kx, (N, C_IN, H, W), dtype=jnp.float32)

    # Deterministic parameter init (PyTorch-like fan-in scaling).
    fan_in = C_IN * KH * KW
    bound = 1.0 / (fan_in ** 0.5)
    w = jax.random.uniform(kw, (C_OUT, C_IN, KH, KW), jnp.float32,
                           minval=-bound, maxval=bound)
    b = jax.random.uniform(kb, (C_OUT,), jnp.float32,
                           minval=-bound, maxval=bound)
    # Non-trivial affine params to exercise the in-kernel BN path.
    gamma = 1.0 + 0.1 * jax.random.normal(kg, (C_IN,), dtype=jnp.float32)
    beta = 0.1 * jax.random.normal(kbe, (C_IN,), dtype=jnp.float32)

    y = jax.block_until_ready(jax.jit(bn_then_conv)(x, w, b, gamma, beta))

    y_ref = _reference(x, w, b, gamma, beta)
    assert y.shape == (N, C_OUT, H - 2, W - 2), y.shape
    assert jnp.allclose(y, y_ref, atol=1e-2, rtol=1e-2), "mismatch vs reference"

    print("KERNEL_OK")
</pallas_src>

<mosaic_0001>
module attributes {stable_mosaic.version = 11 : i64} {
  func.func @fused_kernel(%arg0: memref<2x4x256xf32, #tpu.memory_space<vmem>>, %arg1: memref<8x40xf32, #tpu.memory_space<vmem>>, %arg2: memref<8x1xf32, #tpu.memory_space<vmem>>, %arg3: memref<4x1xf32, #tpu.memory_space<vmem>>, %arg4: memref<4x1xf32, #tpu.memory_space<vmem>>, %arg5: memref<2x8x256xf32, #tpu.memory_space<vmem>>) attributes {dimension_semantics = [], scalar_prefetch = 0 : i64, scratch_operands = 0 : i64, tpu.core_type = #tpu.core_type<tc>} {
    %c0 = arith.constant 0 : index
    %c0_0 = arith.constant 0 : index
    %c0_1 = arith.constant 0 : index
    %0 = vector.load %arg0[%c0, %c0_0, %c0_1] : memref<2x4x256xf32, #tpu.memory_space<vmem>>, vector<1x4x256xf32>
    %1 = vector.shape_cast %0 : vector<1x4x256xf32> to vector<4x256xf32>
    %c1 = arith.constant 1 : index
    %c0_2 = arith.constant 0 : index
    %c0_3 = arith.constant 0 : index
    %2 = vector.load %arg0[%c1, %c0_2, %c0_3] : memref<2x4x256xf32, #tpu.memory_space<vmem>>, vector<1x4x256xf32>
    %3 = vector.shape_cast %2 : vector<1x4x256xf32> to vector<4x256xf32>
    %4 = tpu.concatenate %1, %3 in 1 : vector<4x256xf32>, vector<4x256xf32> -> vector<4x512xf32>
    %cst = arith.constant dense<0.000000e+00> : vector<4xf32>
    %5 = vector.multi_reduction <add>, %4, %cst [1] : vector<4x512xf32> to vector<4xf32>
    %6 = vector.shape_cast %5 : vector<4xf32> to vector<4x1xf32>
    %cst_4 = arith.constant 0.001953125 : f32
    %7 = vector.broadcast %cst_4 : f32 to vector<4x1xf32>
    %8 = arith.mulf %6, %7 : vector<4x1xf32>
    %9 = vector.broadcast %8 : vector<4x1xf32> to vector<4x512xf32>
    %10 = arith.subf %4, %9 : vector<4x512xf32>
    %11 = arith.mulf %10, %10 : vector<4x512xf32>
    %cst_5 = arith.constant dense<0.000000e+00> : vector<4xf32>
    %12 = vector.multi_reduction <add>, %11, %cst_5 [1] : vector<4x512xf32> to vector<4xf32>
    %13 = vector.shape_cast %12 : vector<4xf32> to vector<4x1xf32>
    %cst_6 = arith.constant 0.001953125 : f32
    %14 = vector.broadcast %cst_6 : f32 to vector<4x1xf32>
    %15 = arith.mulf %13, %14 : vector<4x1xf32>
    %c0_7 = arith.constant 0 : index
    %c0_8 = arith.constant 0 : index
    %16 = vector.load %arg3[%c0_7, %c0_8] : memref<4x1xf32, #tpu.memory_space<vmem>>, vector<4x1xf32>
    %cst_9 = arith.constant 9.99999974E-6 : f32
    %17 = vector.broadcast %cst_9 : f32 to vector<4x1xf32>
    %18 = arith.addf %15, %17 : vector<4x1xf32>
    %19 = math.rsqrt %18 : vector<4x1xf32>
    %20 = arith.mulf %16, %19 : vector<4x1xf32>
    %21 = vector.broadcast %20 : vector<4x1xf32> to vector<4x512xf32>
    %22 = arith.mulf %10, %21 : vector<4x512xf32>
    %c0_10 = arith.constant 0 : index
    %c0_11 = arith.constant 0 : index
    %23 = vector.load %arg4[%c0_10, %c0_11] : memref<4x1xf32, #tpu.memory_space<vmem>>, vector<4x1xf32>
    %24 = vector.broadcast %23 : vector<4x1xf32> to vector<4x512xf32>
    %25 = arith.addf %22, %24 : vector<4x512xf32>
    %c511_i32 = arith.constant 511 : i32
    %26 = tpu.dynamic_rotate %25 by %c511_i32 dim 1 : vector<4x512xf32>, i32 -> vector<4x512xf32>
    %c510_i32 = arith.constant 510 : i32
    %27 = tpu.dynamic_rotate %25 by %c510_i32 dim 1 : vector<4x512xf32>, i32 -> vector<4x512xf32>
    %c496_i32 = arith.constant 496 : i32
    %28 = tpu.dynamic_rotate %25 by %c496_i32 dim 1 : vector<4x512xf32>, i32 -> vector<4x512xf32>
    %c495_i32 = arith.constant 495 : i32
    %29 = tpu.dynamic_rotate %25 by %c495_i32 dim 1 : vector<4x512xf32>, i32 -> vector<4x512xf32>
    %c494_i32 = arith.constant 494 : i32
    %30 = tpu.dynamic_rotate %25 by %c494_i32 dim 1 : vector<4x512xf32>, i32 -> vector<4x512xf32>
    %c480_i32 = arith.constant 480 : i32
    %31 = tpu.dynamic_rotate %25 by %c480_i32 dim 1 : vector<4x512xf32>, i32 -> vector<4x512xf32>
    %c479_i32 = arith.constant 479 : i32
    %32 = tpu.dynamic_rotate %25 by %c479_i32 dim 1 : vector<4x512xf32>, i32 -> vector<4x512xf32>
    %c478_i32 = arith.constant 478 : i32
    %33 = tpu.dynamic_rotate %25 by %c478_i32 dim 1 : vector<4x512xf32>, i32 -> vector<4x512xf32>
    %cst_12 = arith.constant 0.000000e+00 : f32
    %34 = vector.broadcast %cst_12 : f32 to vector<4x512xf32>
    %35 = tpu.concatenate %25, %26, %27, %28, %29, %30, %31, %32, %33, %34 in 0 : vector<4x512xf32>, vector<4x512xf32>, vector<4x512xf32>, vector<4x512xf32>, vector<4x512xf32>, vector<4x512xf32>, vector<4x512xf32>, vector<4x512xf32>, vector<4x512xf32>, vector<4x512xf32> -> vector<40x512xf32>
    %c0_13 = arith.constant 0 : index
    %c0_14 = arith.constant 0 : index
    %36 = vector.load %arg1[%c0_13, %c0_14] : memref<8x40xf32, #tpu.memory_space<vmem>>, vector<8x40xf32>
    %cst_15 = arith.constant dense<0.000000e+00> : vector<8x512xf32>
    %37 = tpu.matmul %36, %35, %cst_15 {dimension_numbers = #tpu.dot_dimension_numbers<[1], [0], [0], [1], [0, 0, 1, 1], [], []>} : vector<8x40xf32>, vector<40x512xf32>, vector<8x512xf32> -> vector<8x512xf32>
    %c0_16 = arith.constant 0 : index
    %c0_17 = arith.constant 0 : index
    %38 = vector.load %arg2[%c0_16, %c0_17] : memref<8x1xf32, #tpu.memory_space<vmem>>, vector<8x1xf32>
    %39 = vector.broadcast %38 : vector<8x1xf32> to vector<8x512xf32>
    %40 = arith.addf %37, %39 : vector<8x512xf32>
    %41 = vector.extract_strided_slice %40 {offsets = [0, 0], sizes = [8, 256], strides = [1, 1]} : vector<8x512xf32> to vector<8x256xf32>
    %c0_18 = arith.constant 0 : index
    %c0_19 = arith.constant 0 : index
    %c0_20 = arith.constant 0 : index
    %42 = vector.load %arg5[%c0_18, %c0_19, %c0_20] : memref<2x8x256xf32, #tpu.memory_space<vmem>>, vector<1x8x256xf32>
    %43 = vector.shape_cast %42 : vector<1x8x256xf32> to vector<8x256xf32>
    %44 = vector.shape_cast %41 : vector<8x256xf32> to vector<1x8x256xf32>
    tpu.vector_store %arg5[%c0_18, %c0_19, %c0_20], %44 {strides = array<i32>} : memref<2x8x256xf32, #tpu.memory_space<vmem>>, vector<1x8x256xf32>,
    %45 = vector.extract_strided_slice %40 {offsets = [0, 256], sizes = [8, 256], strides = [1, 1]} : vector<8x512xf32> to vector<8x256xf32>
    %c1_21 = arith.constant 1 : index
    %c0_22 = arith.constant 0 : index
    %c0_23 = arith.constant 0 : index
    %46 = vector.load %arg5[%c1_21, %c0_22, %c0_23] : memref<2x8x256xf32, #tpu.memory_space<vmem>>, vector<1x8x256xf32>
    %47 = vector.shape_cast %46 : vector<1x8x256xf32> to vector<8x256xf32>
    %48 = vector.shape_cast %45 : vector<8x256xf32> to vector<1x8x256xf32>
    tpu.vector_store %arg5[%c1_21, %c0_22, %c0_23], %48 {strides = array<i32>} : memref<2x8x256xf32, #tpu.memory_space<vmem>>, vector<1x8x256xf32>,
    return
  }
}

</mosaic_0001>

<bundles_post_ra>
// kernel: bn_then_conv.1
= control target key start
LH: loop header
LB: loop body
LE: loop exit
PB: predicated region body
PF: predicated region fallthrough
CT: control target
= control target key end

     0   :  { %vm29_vm0 = vcmask 1043456   ;;  %v442_v28 = vmov 0   ;;  %s443_s25 = smov 95   ;;  %s446_s26 = smov 96   ;;  %v451_v46 = vmov 0.0   ;;  %v89_v50 = vlaneseq  ;;  %s626_s0 = inlined_call_operand.vmem [shape: f32[2,4,256], index: 0, kind: input, shape index: {}]   ;;  %s627_s3 = inlined_call_operand.vmem [shape: f32[4,1], index: 3, kind: input, shape index: {}]   ;;  %s628_s4 = inlined_call_operand.vmem [shape: f32[4,1], index: 4, kind: input, shape index: {}]   ;;  %s629_s2 = inlined_call_operand.vmem [shape: f32[8,1], index: 2, kind: input, shape index: {}]   ;;  %s630_s1 = inlined_call_operand.vmem [shape: f32[8,40], index: 1, kind: input, shape index: {}]   ;;  %s631_s5 = inlined_call_operand.vmem [shape: f32[2,8,256], index: 5, kind: output, shape index: {}]  }
   0x1   :  { %v20_v0 = vld [vmem:[%s626_s0] sm:$0xff]  ;;  %v417_v1 = vld [vmem:[%s626_s0 + $0x8] sm:$0xff]  ;;  %436 = vset.pattern.permute.xlu1 %v442_v28  ;;  %437 = vset.pattern.permute.xlu0 %v442_v28  ;;  %s447_s27 = smov 112   ;;  %s448_s28 = smov 111   ;;  %vm262_vm9 = vcmask 326656  }
   0x2   :  { %v24_v2 = vcombine.high %v20_v0, %v20_v0  ;;  %v27_v3 = vcombine.high %v417_v1, %v417_v1  ;;  %v30_v4 = vsel %vm29_vm0, %v20_v0, 0.0  ;;  %v33_v6 = vsel %vm29_vm0, %v417_v1, 0.0  ;;  %v58_v32 = vld [vmem:[%s627_s3] sm:$0xf]  ;;  %s444_s3 = smov 94   ;;  %s449_s29 = smov 127   ;;  %401 = vmatprep.mubr.f32.mxu1 %v451_v46  ;;  %330 = vmatprep.mubr.f32.mxu0 %v451_v46 }
   0x3   :  { %v71_v35 = vld [vmem:[%s628_s4] sm:$0xf]  ;;  %s445_s4 = smov 110   ;;  %s450_s30 = smov 126   ;;  %v545_v53 = vand.u32 127, %v89_v50 }
   0x4   :  { %v31_v5 = vsel %vm29_vm0, %v24_v2, 0.0  ;;  %v35_v8 = vsel %vm29_vm0, %v27_v3, 0.0  ;;  %v256_v47 = vld [vmem:[%s629_s2] sm:$0xff] }
   0x5   :  { %v32_v7 = vadd.f32 %v31_v5, %v30_v4  ;;  %vm182_vm1 = vcmp.lt.s32.totalorder %v545_v53, 94  ;;  %vm169_vm2 = vcmp.lt.s32.totalorder %v545_v53, 95  ;;  %vm156_vm3 = vcmp.lt.s32.totalorder %v545_v53, 96 }
   0x6   :  { %vm143_vm4 = vcmp.lt.s32.totalorder %v545_v53, 110  ;;  %vm130_vm5 = vcmp.lt.s32.totalorder %v545_v53, 111  ;;  %vm117_vm6 = vcmp.lt.s32.totalorder %v545_v53, 112  ;;  %vm91_vm7 = vcmp.lt.s32.totalorder %v545_v53, 127 }
   0x7   :  { %v34_v9 = vadd.f32 %v33_v6, %v32_v7  ;;  %vm104_vm8 = vcmp.lt.s32.totalorder %v545_v53, 126 }
   0x9   :  { %v36_v10 = vadd.f32 %v35_v8, %v34_v9 }
   0xb   :  { %37 = vadd.xlane.f32.xlu0 %v36_v10 }
  0x94   :  { %v38_v11 = vpop.xlane.xlu0 %37 }
  0x95   :  { %v39_v12 = vmul.f32 0.001953125, %v38_v11 }
  0x97   :  { %v40_v13 = vsub.f32 %v20_v0, %v39_v12  ;;  %v41_v14 = vsub.f32 %v24_v2, %v39_v12  ;;  %v42_v15 = vsub.f32 %v417_v1, %v39_v12  ;;  %v43_v16 = vsub.f32 %v27_v3, %v39_v12 }
  0x99   :  { %v44_v17 = vmul.f32 %v40_v13, %v40_v13  ;;  %v45_v18 = vmul.f32 %v41_v14, %v41_v14  ;;  %v46_v19 = vmul.f32 %v42_v15, %v42_v15  ;;  %v47_v20 = vmul.f32 %v43_v16, %v43_v16 }
  0x9b   :  { %v48_v21 = vsel %vm29_vm0, %v44_v17, 0.0  ;;  %v49_v22 = vsel %vm29_vm0, %v45_v18, 0.0  ;;  %v51_v24 = vsel %vm29_vm0, %v46_v19, 0.0  ;;  %v53_v26 = vsel %vm29_vm0, %v47_v20, 0.0 }
  0x9c   :  { %v50_v23 = vadd.f32 %v49_v22, %v48_v21 }
  0x9e   :  { %v52_v25 = vadd.f32 %v51_v24, %v50_v23 }
  0xa0   :  { %v54_v27 = vadd.f32 %v53_v26, %v52_v25 }
  0xa2   :  { %55 = vadd.xlane.f32.xlu0 %v54_v27 }
 0x12b   :  { %v56_v29 = vpop.xlane.xlu0 %55 }
 0x12c   :  { %v57_v30 = vmul.f32 0.001953125, %v56_v29 }
 0x12e   :  { %v59_v31 = vadd.f32 1e-05, %v57_v30 }
 0x130   :  { %440 = vrsqrt.f32 %v59_v31 }
 0x13d   :  { %v441_v33 = vpop.eup %440 }
 0x13e   :  { %v61_v34 = vmul.f32 %v441_v33, %v58_v32 }
 0x140   :  { %64 = vperm.xlu1 %436, %v61_v34  }
 0x144   :  { %74 = vperm.xlu1 %436, %v71_v35  }
 0x1bb   :  { %v65_v36 = vpop.permute.xlu1 %64 }
 0x1bc   :  { %v67_v37 = vmul.f32 %v65_v36, %v40_v13  ;;  %v68_v38 = vmul.f32 %v65_v36, %v41_v14  ;;  %v69_v42 = vmul.f32 %v65_v36, %v42_v15  ;;  %v70_v43 = vmul.f32 %v65_v36, %v43_v16 }
 0x1bf   :  { %v75_v39 = vpop.permute.xlu1 %74 }
 0x1c0   :  { %v502_v40 = vadd.f32 %v75_v39, %v67_v37  ;;  %v504_v41 = vadd.f32 %v75_v39, %v68_v38  ;;  %v508_v44 = vadd.f32 %v75_v39, %v69_v42  ;;  %v510_v45 = vadd.f32 %v75_v39, %v70_v43 }
 0x1c2   :  { %163 = vrot.lane.b32.xlu1 %v504_v41, %s443_s25  ;;  %161 = vrot.lane.b32.xlu0 %v502_v40, %s443_s25 }
 0x1c6   :  { %165 = vrot.lane.b32.xlu1 %v508_v44, %s443_s25  ;;  %180 = vrot.lane.b32.xlu0 %v510_v45, %s444_s3 }
 0x1ca   :  { %167 = vrot.lane.b32.xlu1 %v510_v45, %s443_s25  ;;  %137 = vrot.lane.b32.xlu0 %v504_v41, %s445_s4 }
 0x1ce   :  { %174 = vrot.lane.b32.xlu1 %v502_v40, %s444_s3  ;;  %141 = vrot.lane.b32.xlu0 %v510_v45, %s445_s4 }
 0x1d2   :  { %176 = vrot.lane.b32.xlu1 %v504_v41, %s444_s3  ;;  %150 = vrot.lane.b32.xlu0 %v504_v41, %s446_s26 }
 0x1d6   :  { %178 = vrot.lane.b32.xlu1 %v508_v44, %s444_s3  ;;  %154 = vrot.lane.b32.xlu0 %v510_v45, %s446_s26 }
 0x1da   :  { %135 = vrot.lane.b32.xlu1 %v502_v40, %s445_s4  ;;  %111 = vrot.lane.b32.xlu0 %v504_v41, %s447_s27 }
 0x1de   :  { %139 = vrot.lane.b32.xlu1 %v508_v44, %s445_s4  ;;  %115 = vrot.lane.b32.xlu0 %v510_v45, %s447_s27 }
 0x1e2   :  { %148 = vrot.lane.b32.xlu1 %v502_v40, %s446_s26  ;;  %124 = vrot.lane.b32.xlu0 %v504_v41, %s448_s28 }
 0x1e6   :  { %152 = vrot.lane.b32.xlu1 %v508_v44, %s446_s26  ;;  %128 = vrot.lane.b32.xlu0 %v510_v45, %s448_s28 }
 0x1ea   :  { %109 = vrot.lane.b32.xlu1 %v502_v40, %s447_s27  ;;  %83 = vrot.lane.b32.xlu0 %v504_v41, %s449_s29 }
 0x1ee   :  { %113 = vrot.lane.b32.xlu1 %v508_v44, %s447_s27  ;;  %87 = vrot.lane.b32.xlu0 %v510_v45, %s449_s29 }
 0x1f2   :  { %122 = vrot.lane.b32.xlu1 %v502_v40, %s448_s28  ;;  %98 = vrot.lane.b32.xlu0 %v504_v41, %s450_s30 }
 0x1f6   :  { %126 = vrot.lane.b32.xlu1 %v508_v44, %s448_s28  ;;  %102 = vrot.lane.b32.xlu0 %v510_v45, %s450_s30 }
 0x1fa   :  { %81 = vrot.lane.b32.xlu1 %v502_v40, %s449_s29 }
 0x1fe   :  { %85 = vrot.lane.b32.xlu1 %v508_v44, %s449_s29 }
 0x202   :  { %96 = vrot.lane.b32.xlu1 %v502_v40, %s450_s30 }
 0x206   :  { %100 = vrot.lane.b32.xlu1 %v508_v44, %s450_s30 }
 0x20a   :  { %259 = vperm.xlu1 %436, %v256_v47  }
 0x234   :  { %v164_v48 = vpop.permute.xlu1 %163  ;;  %v162_v49 = vpop.permute.xlu0 %161 }
 0x235   :  { %v172_v12 = vsel %vm169_vm2, %v162_v49, %v164_v48 }
 0x236   :  { %v227_v19 = vrot.slane %v172_v12, 4 }
 0x238   :  { %v166_v51 = vpop.permute.xlu1 %165  ;;  %v181_v52 = vpop.permute.xlu0 %180 }
 0x239   :  { %v171_v9 = vsel %vm169_vm2, %v164_v48, %v166_v51 }
 0x23a   :  { %v228_v15 = vrot.slane %v171_v9, 4 }
 0x23c   :  { %v168_v54 = vpop.permute.xlu1 %167  ;;  %v138_v55 = vpop.permute.xlu0 %137 }
 0x23d   :  { %v173_v6 = vsel %vm169_vm2, %v168_v54, %v162_v49  ;;  %v170_v10 = vsel %vm169_vm2, %v166_v51, %v168_v54 }
 0x23e   :  { %v230_v7 = vrot.slane %v173_v6, 4  ;;  %v229_v16 = vrot.slane %v170_v10, 4 }
 0x240   :  { %v175_v56 = vpop.permute.xlu1 %174  ;;  %v142_v57 = vpop.permute.xlu0 %141 }
 0x241   :  { %v186_v58 = vsel %vm182_vm1, %v181_v52, %v175_v56 }
 0x242   :  { %421 = vmatprep.subr.msk.mxu1 %vm29_vm0, %v186_v58 }
 0x244   :  { %v177_v59 = vpop.permute.xlu1 %176  ;;  %v151_v60 = vpop.permute.xlu0 %150 }
 0x245   :  { %v185_v1 = vsel %vm182_vm1, %v175_v56, %v177_v59 }
 0x248   :  { %v179_v61 = vpop.permute.xlu1 %178  ;;  %v155_v62 = vpop.permute.xlu0 %154 }
 0x249   :  { %v184_v63 = vsel %vm182_vm1, %v177_v59, %v179_v61  ;;  %v183_v0 = vsel %vm182_vm1, %v179_v61, %v181_v52 }
 0x24a   :  { %418 = vmatprep.subr.msk.mxu0 %vm29_vm0, %v184_v63  ;;  %422 = vmatpush1.msk.msra.mxu1 %vm29_vm0, %v183_v0 }
 0x24b   :  { %419 = vmatpush1.msk.msra.mxu0 %vm29_vm0, %v185_v1 }
 0x24c   :  { %v136_v2 = vpop.permute.xlu1 %135  ;;  %v552_v3 = vpop.permute.xlu0 %111 }
 0x24d   :  { %v147_v28 = vsel %vm143_vm4, %v142_v57, %v136_v2  ;;  %v146_v35 = vsel %vm143_vm4, %v136_v2, %v138_v55 }
 0x24e   :  { %v218_v30 = vrot.slane %v147_v28, 4  ;;  %v215_v46 = vrot.slane %v146_v35, 4 }
 0x250   :  { %v140_v4 = vpop.permute.xlu1 %139  ;;  %v555_v5 = vpop.permute.xlu0 %115 }
 0x251   :  { %v144_v32 = vsel %vm143_vm4, %v140_v4, %v142_v57  ;;  %v145_v33 = vsel %vm143_vm4, %v138_v55, %v140_v4 }
 0x252   :  { %v216_v37 = vrot.slane %v145_v33, 4  ;;  %v217_v38 = vrot.slane %v144_v32, 4 }
 0x254   :  { %v149_v8 = vpop.permute.xlu1 %148  ;;  %v125_v13 = vpop.permute.xlu0 %124 }
 0x255   :  { %v160_v11 = vsel %vm156_vm3, %v155_v62, %v149_v8  ;;  %v159_v17 = vsel %vm156_vm3, %v149_v8, %v151_v60 }
 0x256   :  { %v250_v14 = vsel %vm29_vm0, %v160_v11, %v230_v7  ;;  %v247_v24 = vsel %vm29_vm0, %v159_v17, %v227_v19 }
 0x257   :  { %361 = vmatprep.subr.mxu1 %v250_v14 }
 0x258   :  { %v153_v18 = vpop.permute.xlu1 %152  ;;  %v129_v25 = vpop.permute.xlu0 %128 }
 0x259   :  { %v157_v20 = vsel %vm156_vm3, %v153_v18, %v155_v62  ;;  %v158_v21 = vsel %vm156_vm3, %v151_v60, %v153_v18 }
 0x25a   :  { %v248_v22 = vsel %vm29_vm0, %v158_v21, %v228_v15  ;;  %v249_v23 = vsel %vm29_vm0, %v157_v20, %v229_v16  ;;  %v255_v20 = vld [vmem:[%s630_s1] sm:$0xff] }
 0x25b   :  { %290 = vmatprep.subr.mxu0 %v248_v22  ;;  %362 = vmatpush1.msra.mxu1 %v249_v23 }
 0x25c   :  { %v110_v26 = vpop.permute.xlu1 %109  ;;  %291 = vmatpush1.msra.mxu0 %v247_v24  ;;  %v84_v29 = vpop.permute.xlu0 %83 }
 0x25d   :  { %v121_v56 = vsel %vm117_vm6, %v555_v5, %v110_v26  ;;  %v120_v2 = vsel %vm117_vm6, %v110_v26, %v552_v3 }
 0x25e   :  { %v206_v57 = vrot.slane %v121_v56, 4 }
 0x260   :  { %v114_v27 = vpop.permute.xlu1 %113  ;;  %v88_v39 = vpop.permute.xlu0 %87 }
 0x261   :  { %v119_v58 = vsel %vm117_vm6, %v552_v3, %v114_v27  ;;  %v118_v62 = vsel %vm117_vm6, %v114_v27, %v555_v5 }
 0x262   :  { %v204_v7 = vrot.slane %v119_v58, 4  ;;  %v205_v9 = vrot.slane %v118_v62, 4 }
 0x264   :  { %v123_v31 = vpop.permute.xlu1 %122  ;;  %v99_v54 = vpop.permute.xlu0 %98 }
 0x265   :  { %v134_v34 = vsel %vm130_vm5, %v129_v25, %v123_v31  ;;  %v133_v42 = vsel %vm130_vm5, %v123_v31, %v125_v13 }
 0x266   :  { %v246_v36 = vsel %vm29_vm0, %v134_v34, %v218_v30  ;;  %v243_v51 = vsel %vm29_vm0, %v133_v42, %v215_v46 }
 0x267   :  { %363 = vmatprep.subr.mxu1 %v246_v36 }
 0x268   :  { %v127_v43 = vpop.permute.xlu1 %126  ;;  %v103_v59 = vpop.permute.xlu0 %102 }
 0x269   :  { %v131_v47 = vsel %vm130_vm5, %v127_v43, %v129_v25  ;;  %v132_v48 = vsel %vm130_vm5, %v125_v13, %v127_v43  ;;  %v203_v13 = vrot.slane %v120_v2, 4 }
 0x26a   :  { %v244_v49 = vsel %vm29_vm0, %v132_v48, %v216_v37  ;;  %v245_v50 = vsel %vm29_vm0, %v131_v47, %v217_v38 }
 0x26b   :  { %292 = vmatprep.subr.mxu0 %v244_v49  ;;  %364 = vmatpush1.msra.mxu1 %v245_v50 }
 0x26c   :  { %v82_v52 = vpop.permute.xlu1 %81  ;;  %293 = vmatpush1.msra.mxu0 %v243_v51 }
 0x26d   :  { %v95_v60 = vsel %vm91_vm7, %v88_v39, %v82_v52  ;;  %v94_v4 = vsel %vm91_vm7, %v82_v52, %v84_v29 }
 0x26e   :  { %v194_v8 = vrot.slane %v95_v60, 4  ;;  %v191_v14 = vrot.slane %v94_v4, 4 }
 0x270   :  { %v86_v55 = vpop.permute.xlu1 %85  ;;  %v238_v19 = vsel %vm29_vm0, %v510_v45, %v194_v8  ;;  %v235_v22 = vsel %vm29_vm0, %v502_v40, %v191_v14 }
 0x271   :  { %v92_v63 = vsel %vm91_vm7, %v86_v55, %v88_v39  ;;  %v93_v0 = vsel %vm91_vm7, %v84_v29, %v86_v55 }
 0x272   :  { %v192_v10 = vrot.slane %v93_v0, 4  ;;  %v193_v11 = vrot.slane %v92_v63, 4 }
 0x274   :  { %v97_v61 = vpop.permute.xlu1 %96  ;;  %v236_v53 = vsel %vm29_vm0, %v504_v41, %v192_v10  ;;  %v237_v21 = vsel %vm29_vm0, %v508_v44, %v193_v11 }
 0x275   :  { %v108_v1 = vsel %vm104_vm8, %v103_v59, %v97_v61  ;;  %v107_v12 = vsel %vm104_vm8, %v97_v61, %v99_v54 }
 0x276   :  { %v242_v6 = vsel %vm29_vm0, %v108_v1, %v206_v57  ;;  %v239_v18 = vsel %vm29_vm0, %v107_v12, %v203_v13 }
 0x277   :  { %365 = vmatprep.subr.mxu1 %v242_v6 }
 0x278   :  { %v101_v5 = vpop.permute.xlu1 %100 }
 0x279   :  { %v105_v15 = vsel %vm104_vm8, %v101_v5, %v103_v59  ;;  %v106_v3 = vsel %vm104_vm8, %v99_v54, %v101_v5 }
 0x27a   :  { %v240_v16 = vsel %vm29_vm0, %v106_v3, %v204_v7  ;;  %v241_v17 = vsel %vm29_vm0, %v105_v15, %v205_v9 }
 0x27b   :  { %294 = vmatprep.subr.mxu0 %v240_v16  ;;  %366 = vmatpush1.msra.mxu1 %v241_v17 }
 0x27c   :  { %295 = vmatpush1.msra.mxu0 %v239_v18  ;;  %367 = vmatprep.subr.mxu1 %v238_v19 }
 0x27d   :  { %296 = vmatprep.subr.mxu0 %v236_v53  ;;  %368 = vmatpush1.msra.mxu1 %v237_v21 }
 0x27e   :  { %297 = vmatpush1.msra.mxu0 %v235_v22  ;;  %423 = vmatmul.mubr.msk.f32.vlgmr.msra.gmra.mxu1 %vm262_vm9, %v255_v20 }
 0x27f   :  { %420 = vmatmul.mubr.msk.f32.vlgmr.msra.gmra.mxu0 %vm262_vm9, %v255_v20 }
 0x285   :  { %v260_v45 = vpop.permute.xlu1 %259 }
 0x33e   :  { %v403_v23 = vpop.f32.mrf.mxu1 }
 0x33f   :  { %v404_v24 = vadd.f32 %v403_v23, %v260_v45  ;;  %v332_v25 = vpop.f32.mrf.mxu0 }
 0x340   :  { %v333_v26 = vadd.f32 %v332_v25, %v260_v45  ;;  %v405_v27 = vpop.f32.mrf.mxu1 }
 0x341   :  { %424 = vst [vmem:[%s631_s5 + $0x10] sm:$0xff] %v404_v24  ;;  %v406_v41 = vadd.f32 %v405_v27, %v260_v45  ;;  %v334_v44 = vpop.f32.mrf.mxu0 }
 0x342   :  { %408 = vst [vmem:[%s631_s5] sm:$0xff] %v333_v26  ;;  %v335_v40 = vadd.f32 %v334_v44, %v260_v45 }
 0x343   :  { %425 = vst [vmem:[%s631_s5 + $0x18] sm:$0xff] %v406_v41 }
 0x344   :  { %409 = vst [vmem:[%s631_s5 + $0x8] sm:$0xff] %v335_v40 }

</bundles_post_ra>
